<compile_context>
chip_gen: v6e
topology: v6e:2x2x1
jax: 0.10.0
libtpu: 0.0.40
codegen_flags: <defaults>
</compile_context>

<pallas_src>
import functools

import jax
import jax.numpy as jnp
from jax import lax
from jax.experimental import pallas as pl
from jax.experimental.pallas import tpu as pltpu


def _nonlocal_kernel(x_ref, wqkv_ref, bqkv_ref, ww_ref, bw_ref,
                     out_ref, pg_scr, *, bblk, seq, ci, cdt):
    """One batch block: (bblk*seq, C) rows of the flattened (B*T, C) input."""
    bt = bblk * seq
    tp = seq // 2                                   # pooled key length

    x = x_ref[...]                                  # (bt, C) float32

    # Fused theta/phi/g 1x1 convs: a single (bt, C) @ (C, 3*Ci) MXU matmul.
    qkv = jnp.dot(x.astype(cdt), wqkv_ref[...],
                  preferred_element_type=jnp.float32) + bqkv_ref[...]   # (bt, 3*Ci)
    theta = qkv[:, :ci]                             # (bt, Ci)
    pg = qkv[:, ci:]                                # (bt, 2*Ci) = [phi | g]

    # MaxPool1d(kernel=2, stride=2) over time. Pairs (2r, 2r+1) never cross a batch
    # boundary (seq is even), so pooling the flattened block is exact. Shift by one
    # row, take the pairwise max, then read only the even rows back with a strided
    # slice -> true T/2 keys/values (no duplicated-row 2x inflation).
    nxt = jnp.concatenate([pg[1:], pg[:1]], axis=0)         # nxt[r] = pg[r+1]
    pg_scr[...] = jnp.maximum(pg, nxt)                      # even rows hold pair maxima
    pooled = pg_scr[pl.ds(0, bt // 2, stride=2), :]         # (bt/2, 2*Ci)
    phi_p = pooled[:, :ci]
    g_p = pooled[:, ci:]

    # Attention per batch element. Softmax normalization is applied AFTER the PV
    # matmul (O(T*Ci) multiplies + EUP reciprocal instead of O(T*T/2) divides).
    ys = []
    for b in range(bblk):
        q_b = theta[b * seq:(b + 1) * seq, :]               # (seq, Ci)
        k_b = phi_p[b * tp:(b + 1) * tp, :]                  # (tp, Ci)
        v_b = g_p[b * tp:(b + 1) * tp, :]                    # (tp, Ci)
        f = lax.dot_general(q_b.astype(cdt), k_b.astype(cdt),
                            (((1,), (1,)), ((), ())),
                            preferred_element_type=jnp.float32)          # (seq, tp)
        f = f - jnp.max(f, axis=-1, keepdims=True)
        p = jnp.exp(f)
        s = jnp.sum(p, axis=-1, keepdims=True)
        y = jnp.dot(p.astype(cdt), v_b.astype(cdt),
                    preferred_element_type=jnp.float32)                   # (seq, Ci)
        ys.append(y * pl.reciprocal(s, approx=False))
    y_all = ys[0] if bblk == 1 else jnp.concatenate(ys, axis=0)           # (bt, Ci)

    # W 1x1 conv with eval-mode BatchNorm1d folded in on the host, then residual.
    wy = jnp.dot(y_all.astype(cdt), ww_ref[...],
                 preferred_element_type=jnp.float32) + bw_ref[...]        # (bt, C)
    z = wy + x

    # Per-sample mean over T.
    for b in range(bblk):
        out_ref[b] = jnp.mean(z[b * seq:(b + 1) * seq, :], axis=0, keepdims=True)


def _pick_bblk(batch, seq):
    """Largest batch block (<=8 samples, <=1024 rows, sublane-aligned) that still
    leaves >=2 grid steps (v7x megacore)."""
    cands = [d for d in range(1, batch + 1)
             if batch % d == 0 and d <= 8 and d * seq <= 1024
             and ((d * seq) % 8 == 0 or d == batch)]
    if not cands:
        return batch
    two_step = [d for d in cands if batch // d >= 2]
    return max(two_step) if two_step else max(cands)


def nonlocal_block_forward(x, params, *, bblk=None, use_bf16=False):
    """x: (B, C, T) float32 (PyTorch NCT layout).  Returns (B, C)."""
    B, C, T = x.shape
    Ci = params["wt"].shape[0]
    assert T % 2 == 0, "MaxPool1d(2) path requires even T"
    cdt = jnp.bfloat16 if use_bf16 else jnp.float32

    # Channels-last, flattened over batch*time so the projections run as one matmul.
    x_t = jnp.transpose(x, (0, 2, 1)).astype(jnp.float32)     # (B, T, C)
    x_flat = x_t.reshape(B * T, C)

    # Fused + pre-transposed theta/phi/g weights -> one (C, 3*Ci) matrix.
    wqkv = jnp.concatenate(
        [params["wt"].T, params["wp"].T, params["wg"].T], axis=1)          # (C, 3*Ci)
    bqkv = jnp.concatenate(
        [params["bt"], params["bp"], params["bg"]]).reshape(1, 3 * Ci)

    # Fold eval-mode BatchNorm1d into the W conv: w' = ww^T * s, b' = (bw - rm)*s + beta.
    scale = params["gamma"] * lax.rsqrt(params["rv"] + 1e-5)               # (C,)
    w_w = params["ww"].T * scale[None, :]                                   # (Ci, C)
    b_w = ((params["bw"] - params["rm"]) * scale + params["beta"]).reshape(1, C)

    if bblk is None:
        bblk = _pick_bblk(B, T)
    assert B % bblk == 0
    assert (bblk * T) % 8 == 0 or bblk == B, "block rows must be sublane-aligned"
    grid = (B // bblk,)

    kernel = functools.partial(_nonlocal_kernel, bblk=bblk, seq=T, ci=Ci, cdt=cdt)

    def full2d(shape):
        return pl.BlockSpec(shape, lambda i: (0, 0))

    out = pl.pallas_call(
        kernel,
        out_shape=jax.ShapeDtypeStruct((B, 1, C), jnp.float32),
        grid_spec=pltpu.PrefetchScalarGridSpec(
            num_scalar_prefetch=0,
            grid=grid,
            in_specs=[
                pl.BlockSpec((bblk * T, C), lambda i: (i, 0)),   # x rows for this block
                full2d((C, 3 * Ci)),                              # fused qkv weights
                full2d((1, 3 * Ci)),                              # fused qkv bias
                full2d((Ci, C)),                                  # W conv (BN folded)
                full2d((1, C)),                                   # W bias (BN folded)
            ],
            out_specs=pl.BlockSpec((bblk, 1, C), lambda i: (i, 0, 0)),
            scratch_shapes=[pltpu.VMEM((bblk * T, 2 * Ci), jnp.float32)],
        ),
        compiler_params=pltpu.CompilerParams(
            dimension_semantics=("parallel",),
            vmem_limit_bytes=64 * 1024 * 1024,   # explicit budget (v7x has 64 MiB/TC)
        ),
    )(x_flat,
      wqkv.astype(cdt), bqkv.astype(jnp.float32),
      w_w.astype(cdt), b_w.astype(jnp.float32))
    return out[:, 0, :]


def reference_forward(x, p):
    """Pure-JAX mirror of the PyTorch forward (eval semantics)."""
    B, C, T = x.shape
    Ci = p["wt"].shape[0]

    def conv1x1(v, w, b):
        return jnp.einsum("oc,bct->bot", w, v) + b[None, :, None]

    g_x = conv1x1(x, p["wg"], p["bg"])
    g_x = jnp.max(g_x.reshape(B, Ci, T // 2, 2), axis=-1)       # MaxPool1d(2)
    g_x = jnp.transpose(g_x, (0, 2, 1))                          # (B, T/2, Ci)
    theta_x = jnp.transpose(conv1x1(x, p["wt"], p["bt"]), (0, 2, 1))  # (B, T, Ci)
    phi_x = conv1x1(x, p["wp"], p["bp"])
    phi_x = jnp.max(phi_x.reshape(B, Ci, T // 2, 2), axis=-1)    # (B, Ci, T/2)
    f = jnp.einsum("btc,bcs->bts", theta_x, phi_x)
    f_div_C = jax.nn.softmax(f, axis=-1)
    y = jnp.einsum("bts,bsc->btc", f_div_C, g_x)                 # (B, T, Ci)
    y = jnp.transpose(y, (0, 2, 1))                              # (B, Ci, T)
    W_y = jnp.einsum("oc,bct->bot", p["ww"], y) + p["bw"][None, :, None]
    W_y = ((W_y - p["rm"][None, :, None])
           * lax.rsqrt(p["rv"][None, :, None] + 1e-5)
           * p["gamma"][None, :, None] + p["beta"][None, :, None])
    z = W_y + x
    return jnp.mean(jnp.transpose(z, (0, 2, 1)), axis=1)         # (B, C)


def init_params(key, in_channels, inter_channels):
    C, Ci = in_channels, inter_channels
    ks = jax.random.split(key, 8)

    def conv_init(kw, kb, out_c, in_c):
        bound = 1.0 / float(in_c) ** 0.5        # PyTorch Conv1d default init
        w = jax.random.uniform(kw, (out_c, in_c), jnp.float32, -bound, bound)
        b = jax.random.uniform(kb, (out_c,), jnp.float32, -bound, bound)
        return w, b

    wg, bg = conv_init(ks[0], ks[1], Ci, C)
    wt, bt = conv_init(ks[2], ks[3], Ci, C)
    wp, bp = conv_init(ks[4], ks[5], Ci, C)
    ww, bw = conv_init(ks[6], ks[7], C, Ci)
    return dict(
        wg=wg, bg=bg, wt=wt, bt=bt, wp=wp, bp=bp, ww=ww, bw=bw,
        gamma=jnp.zeros((C,), jnp.float32),   # nn.init.constant_(W[1].weight, 0)
        beta=jnp.zeros((C,), jnp.float32),    # nn.init.constant_(W[1].bias, 0)
        rm=jnp.zeros((C,), jnp.float32),      # BN running_mean
        rv=jnp.ones((C,), jnp.float32),       # BN running_var
    )


if __name__ == "__main__":
    B, C, T = 2, 8, 16            # in_channels=8, inter_channels defaults to 8
    key = jax.random.PRNGKey(0)
    kx, kp, kg = jax.random.split(key, 3)
    x = jax.random.normal(kx, (B, C, T), jnp.float32)
    params = init_params(kp, C, C)

    out = jax.block_until_ready(nonlocal_block_forward(x, params))
    ref = reference_forward(x, params)
    assert out.shape == (B, C)
    assert jnp.allclose(out, ref, rtol=1e-4, atol=1e-5)

    # Module-faithful params have BN gamma == 0 (W_y vanishes), which would hide
    # attention-path bugs; exercise the full path with nonzero BN params too.
    params2 = dict(params)
    params2["gamma"] = jax.random.normal(kg, (C,), jnp.float32)
    params2["beta"] = 0.3 * jnp.ones((C,), jnp.float32)
    out2 = jax.block_until_ready(nonlocal_block_forward(x, params2))
    ref2 = reference_forward(x, params2)
    assert jnp.allclose(out2, ref2, rtol=1e-4, atol=1e-5)

    # bf16-MXU-operand fast path (v6e/v7x); f32 accumulation, looser tolerance.
    out3 = jax.block_until_ready(nonlocal_block_forward(x, params2, use_bf16=True))
    assert jnp.allclose(out3, ref2, rtol=5e-2, atol=5e-2)

    print("KERNEL_OK")
</pallas_src>

<mosaic_0001>
module attributes {stable_mosaic.version = 11 : i64} {
  func.func @_nonlocal_kernel(%arg0: i32, %arg1: memref<16x8xf32, #tpu.memory_space<vmem>>, %arg2: memref<8x24xf32, #tpu.memory_space<vmem>>, %arg3: memref<1x24xf32, #tpu.memory_space<vmem>>, %arg4: memref<8x8xf32, #tpu.memory_space<vmem>>, %arg5: memref<1x8xf32, #tpu.memory_space<vmem>>, %arg6: memref<1x1x8xf32, #tpu.memory_space<vmem>>, %arg7: memref<16x16xf32, #tpu.memory_space<vmem>>) attributes {dimension_semantics = [#tpu.dimension_semantics<parallel>], iteration_bounds = array<i64: 2>, scalar_prefetch = 0 : i64, scratch_operands = 1 : i64, tpu.core_type = #tpu.core_type<tc>, window_params = [{transform_indices = @transform_0, window_bounds = array<i64: 16, 8>}, {pipeline_mode = #tpu.pipeline_mode<synchronous>, transform_indices = @transform_1, window_bounds = array<i64: 8, 24>}, {pipeline_mode = #tpu.pipeline_mode<synchronous>, transform_indices = @transform_2, window_bounds = array<i64: 1, 24>}, {pipeline_mode = #tpu.pipeline_mode<synchronous>, transform_indices = @transform_3, window_bounds = array<i64: 8, 8>}, {pipeline_mode = #tpu.pipeline_mode<synchronous>, transform_indices = @transform_4, window_bounds = array<i64: 1, 8>}, {transform_indices = @transform_5, window_bounds = array<i64: 1, 1, 8>}]} {
    %c0 = arith.constant 0 : index
    %c0_0 = arith.constant 0 : index
    %0 = vector.load %arg1[%c0, %c0_0] : memref<16x8xf32, #tpu.memory_space<vmem>>, vector<16x8xf32>
    %c0_1 = arith.constant 0 : index
    %c0_2 = arith.constant 0 : index
    %1 = vector.load %arg2[%c0_1, %c0_2] : memref<8x24xf32, #tpu.memory_space<vmem>>, vector<8x24xf32>
    %cst = arith.constant dense<0.000000e+00> : vector<16x24xf32>
    %2 = tpu.matmul %0, %1, %cst {dimension_numbers = #tpu.dot_dimension_numbers<[1], [0], [0], [1], [0, 0, 1, 1], [], []>} : vector<16x8xf32>, vector<8x24xf32>, vector<16x24xf32> -> vector<16x24xf32>
    %c0_3 = arith.constant 0 : index
    %c0_4 = arith.constant 0 : index
    %3 = vector.load %arg3[%c0_3, %c0_4] : memref<1x24xf32, #tpu.memory_space<vmem>>, vector<1x24xf32>
    %4 = vector.broadcast %3 : vector<1x24xf32> to vector<16x24xf32>
    %5 = arith.addf %2, %4 : vector<16x24xf32>
    %6 = vector.extract_strided_slice %5 {offsets = [0, 0], sizes = [16, 8], strides = [1, 1]} : vector<16x24xf32> to vector<16x8xf32>
    %7 = vector.extract_strided_slice %5 {offsets = [0, 8], sizes = [16, 16], strides = [1, 1]} : vector<16x24xf32> to vector<16x16xf32>
    %8 = vector.extract_strided_slice %7 {offsets = [1, 0], sizes = [15, 16], strides = [1, 1]} : vector<16x16xf32> to vector<15x16xf32>
    %9 = vector.extract_strided_slice %7 {offsets = [0, 0], sizes = [1, 16], strides = [1, 1]} : vector<16x16xf32> to vector<1x16xf32>
    %10 = tpu.concatenate %8, %9 in 0 : vector<15x16xf32>, vector<1x16xf32> -> vector<16x16xf32>
    %11 = arith.maximumf %7, %10 : vector<16x16xf32>
    %c0_5 = arith.constant 0 : index
    %c0_6 = arith.constant 0 : index
    %12 = vector.load %arg7[%c0_5, %c0_6] : memref<16x16xf32, #tpu.memory_space<vmem>>, vector<16x16xf32>
    tpu.vector_store %arg7[%c0_5, %c0_6], %11 {strides = array<i32>} : memref<16x16xf32, #tpu.memory_space<vmem>>, vector<16x16xf32>,
    %c0_7 = arith.constant 0 : index
    %c0_8 = arith.constant 0 : index
    %13 = tpu.strided_load %arg7[%c0_7, %c0_8] {strides = array<i32: 2, 1>} : memref<16x16xf32, #tpu.memory_space<vmem>>, vector<8x16xf32>
    %14 = vector.extract_strided_slice %13 {offsets = [0, 0], sizes = [8, 8], strides = [1, 1]} : vector<8x16xf32> to vector<8x8xf32>
    %15 = vector.extract_strided_slice %13 {offsets = [0, 8], sizes = [8, 8], strides = [1, 1]} : vector<8x16xf32> to vector<8x8xf32>
    %cst_9 = arith.constant dense<0.000000e+00> : vector<16x8xf32>
    %16 = tpu.matmul %6, %14, %cst_9 {dimension_numbers = #tpu.dot_dimension_numbers<[1], [1], [0], [0], [0, 0, 1, 0], [], []>} : vector<16x8xf32>, vector<8x8xf32>, vector<16x8xf32> -> vector<16x8xf32>
    %cst_10 = arith.constant dense<0xFF800000> : vector<16xf32>
    %17 = vector.multi_reduction <maximumf>, %16, %cst_10 [1] : vector<16x8xf32> to vector<16xf32>
    %18 = vector.shape_cast %17 : vector<16xf32> to vector<16x1xf32>
    %19 = vector.broadcast %18 : vector<16x1xf32> to vector<16x8xf32>
    %20 = arith.subf %16, %19 : vector<16x8xf32>
    %21 = math.exp %20 : vector<16x8xf32>
    %cst_11 = arith.constant dense<0.000000e+00> : vector<16xf32>
    %22 = vector.multi_reduction <add>, %21, %cst_11 [1] : vector<16x8xf32> to vector<16xf32>
    %23 = vector.shape_cast %22 : vector<16xf32> to vector<16x1xf32>
    %cst_12 = arith.constant dense<0.000000e+00> : vector<16x8xf32>
    %24 = tpu.matmul %21, %15, %cst_12 {dimension_numbers = #tpu.dot_dimension_numbers<[1], [0], [0], [1], [0, 0, 1, 1], [], []>} : vector<16x8xf32>, vector<8x8xf32>, vector<16x8xf32> -> vector<16x8xf32>
    %25 = tpu.reciprocal %23 : vector<16x1xf32> -> vector<16x1xf32>
    %26 = vector.broadcast %25 : vector<16x1xf32> to vector<16x8xf32>
    %27 = arith.mulf %24, %26 : vector<16x8xf32>
    %c0_13 = arith.constant 0 : index
    %c0_14 = arith.constant 0 : index
    %28 = vector.load %arg4[%c0_13, %c0_14] : memref<8x8xf32, #tpu.memory_space<vmem>>, vector<8x8xf32>
    %cst_15 = arith.constant dense<0.000000e+00> : vector<16x8xf32>
    %29 = tpu.matmul %27, %28, %cst_15 {dimension_numbers = #tpu.dot_dimension_numbers<[1], [0], [0], [1], [0, 0, 1, 1], [], []>} : vector<16x8xf32>, vector<8x8xf32>, vector<16x8xf32> -> vector<16x8xf32>
    %c0_16 = arith.constant 0 : index
    %c0_17 = arith.constant 0 : index
    %30 = vector.load %arg5[%c0_16, %c0_17] : memref<1x8xf32, #tpu.memory_space<vmem>>, vector<1x8xf32>
    %31 = vector.broadcast %30 : vector<1x8xf32> to vector<16x8xf32>
    %32 = arith.addf %29, %31 : vector<16x8xf32>
    %33 = arith.addf %32, %0 : vector<16x8xf32>
    %cst_18 = arith.constant dense<0.000000e+00> : vector<8xf32>
    %34 = vector.multi_reduction <add>, %33, %cst_18 [0] : vector<16x8xf32> to vector<8xf32>
    %35 = vector.shape_cast %34 : vector<8xf32> to vector<1x8xf32>
    %cst_19 = arith.constant 1.600000e+01 : f32
    %36 = vector.broadcast %cst_19 : f32 to vector<1x8xf32>
    %37 = arith.divf %35, %36 : vector<1x8xf32>
    %c0_20 = arith.constant 0 : index
    %c0_21 = arith.constant 0 : index
    %c0_22 = arith.constant 0 : index
    %38 = vector.load %arg6[%c0_20, %c0_21, %c0_22] : memref<1x1x8xf32, #tpu.memory_space<vmem>>, vector<1x1x8xf32>
    %39 = vector.shape_cast %38 : vector<1x1x8xf32> to vector<1x8xf32>
    %40 = vector.shape_cast %37 : vector<1x8xf32> to vector<1x1x8xf32>
    tpu.vector_store %arg6[%c0_20, %c0_21, %c0_22], %40 {strides = array<i32>} : memref<1x1x8xf32, #tpu.memory_space<vmem>>, vector<1x1x8xf32>,
    return
  }
  func.func @transform_0(%arg0: i32) -> (i32, i32) {
    %c0_i32 = arith.constant 0 : i32
    %c0_i32_0 = arith.constant 0 : i32
    return %arg0, %c0_i32 : i32, i32
  }
  func.func @transform_1(%arg0: i32) -> (i32, i32) {
    %c0_i32 = arith.constant 0 : i32
    %c0_i32_0 = arith.constant 0 : i32
    %c0_i32_1 = arith.constant 0 : i32
    return %c0_i32, %c0_i32_0 : i32, i32
  }
  func.func @transform_2(%arg0: i32) -> (i32, i32) {
    %c0_i32 = arith.constant 0 : i32
    %c0_i32_0 = arith.constant 0 : i32
    %c0_i32_1 = arith.constant 0 : i32
    return %c0_i32, %c0_i32_0 : i32, i32
  }
  func.func @transform_3(%arg0: i32) -> (i32, i32) {
    %c0_i32 = arith.constant 0 : i32
    %c0_i32_0 = arith.constant 0 : i32
    %c0_i32_1 = arith.constant 0 : i32
    return %c0_i32, %c0_i32_0 : i32, i32
  }
  func.func @transform_4(%arg0: i32) -> (i32, i32) {
    %c0_i32 = arith.constant 0 : i32
    %c0_i32_0 = arith.constant 0 : i32
    %c0_i32_1 = arith.constant 0 : i32
    return %c0_i32, %c0_i32_0 : i32, i32
  }
  func.func @transform_5(%arg0: i32) -> (i32, i32, i32) {
    %c0_i32 = arith.constant 0 : i32
    %c0_i32_0 = arith.constant 0 : i32
    %c0_i32_1 = arith.constant 0 : i32
    return %arg0, %c0_i32, %c0_i32_0 : i32, i32, i32
  }
}

</mosaic_0001>

<bundles_post_ra>
// kernel: tpu_custom_call.1
= control target key start
LH: loop header
LB: loop body
LE: loop exit
PB: predicated region body
PF: predicated region fallthrough
CT: control target
= control target key end

     0   :  { %10 = vsyncpa [#allocation4], 0  ;;  %s1016_s0 = inlined_call_operand.vmem [shape: f32[32,8], index: 0, kind: input, shape index: {}]   ;;  %s1017_s1 = inlined_call_operand.vmem [shape: f32[8,24], index: 1, kind: input, shape index: {}]   ;;  %s1018_s2 = inlined_call_operand.vmem [shape: f32[1,24], index: 2, kind: input, shape index: {}]   ;;  %s1019_s3 = inlined_call_operand.vmem [shape: f32[8,8], index: 3, kind: input, shape index: {}]   ;;  %s1020_s4 = inlined_call_operand.vmem [shape: f32[1,8], index: 4, kind: input, shape index: {}]   ;;  %s1021_s5 = inlined_call_operand.hbm [shape: f32[2,1,8], index: 5, kind: output, shape index: {}]  }
   0x1   :  { %12 = vsyncpa [#allocation4 + $0x1], 0  ;;  %s894_s18 = smov 0   ;;  %s896_s19 = smov 0  }
   0x2   :  { %s898_s20 = smov 0   ;;  %s900_s21 = smov 0  }
   0x3 LB: > { %s915_s22 = sadd.s32 4294967295, %s860_s21   ;;  %s700_s23 = sadd.s32 4294967294, %s860_s21   ;;  %s860_s21 = sphi %s900_s21, %s1027_s21   ;;  %s856_s20 = sphi %s898_s20, %s1026_s20   ;;  %s852_s19 = sphi %s896_s19, %s1025_s19   ;;  %s848_s18 = sphi %s894_s18, %s1024_s18  }
   0x4   : > { %s919_s24 = sadd.s32 1, %s860_s21   ;;  %s135_s25 = sadd.s32 1, %s856_s20 }
   0x5   : > { %s132_s26 = ssub.s32 %s860_s21, %s919_s24  ;;  %p145_p0 = scmp.ne.s32.totalorder %s856_s20, %s852_s19 }
   0x6   : > { %p133_p1 = scmp.eq.s32.totalorder %s132_s26, 0  ;;  %p146_p2 = scmp.eq.s32.totalorder %s915_s22, 1 }
   0x7   : > { %p151_p3 = scmp.ne.s32.totalorder %s852_s19, %s848_s18  ;;  %p152_p4 = scmp.eq.s32.totalorder %s700_s23, 1 }
   0x8   : > { %s930_s27 = scalar_select %p133_p1, %s856_s20, %s135_s25  }
   0x9   : > { %p932_p5 = por %p146_p2, %p145_p0  ;;  %p936_p6 = por %p152_p4, %p151_p3 }
   0xa   : > { %p703_p7 = scmp.ge.s32.totalorder %s860_s21, 1  ;;  %p191_p8 = scmp.lt.s32.totalorder %s860_s21, 3 }
   0xc   : > { %p192_p9 = pnand %p703_p7, %p191_p8 }
   0xd   : > { %s704_s7 = sshll.u32 (!%p192_p9), %s915_s22, 1  ;;  %s862_s14 = smov (!%p192_p9), 120  }
   0xe   : > { %195 = sbr.rel (%p192_p9) target bundleno = 1140 (0x474), region = 40  ;;  %p219_p10 = scmp.lt.s32.totalorder (!%p192_p9), %s704_s7, 3 }
   0xf   : > { %s216_s25 = sand.u32 (!%p192_p9), 1, %s852_s19   ;;  %s717_s26 = sshll.u32 (!%p192_p9), %s915_s22, 4 }
  0x10   : > { %s217_s30 = scalar_lea.vmem (!%p192_p9), [#allocation3], %s216_s25  ;;  %s643_s9 = scalar_lea.hbm (!%p192_p9), %s1021_s5, %s717_s26 }
  0x11   : > { %s645_s6 = sshll.u32 (!%p192_p9), %s217_s30, 4  ;;  %s633_s10 = scalar_lea.sflag (!%p192_p9), [#allocation4], %s216_s25  ;;  %s646_s6 = int_to_ptr.vmem [resolvable:$true] %s645_s6 }
  0x12   : > { %s863_s12 = smov (!%p192_p9), [#allocation3]  }
  0x13   : > { %v226_v0 = vld [vmem:[%s1017_s1] sm:$0xff]  ;;  %s1029_s7 = smov (!%p219_p10, %s704_s7), 3  ;;  %vm234_vm0 = vcmask 64512   ;;  %vm318_vm1 = vcmask 1046528   ;;  %vm336_vm2 = vcmask 130048   ;;  %vm630_vm3 = vcmask 57344  }
  0x14   : > { %732 = vmatprep.subr.mxu0 %v226_v0  ;;  %s705_s8 = sshll.u32 %s1029_s7, 3  ;;  %v706_v3 = vld [vmem:[%s1018_s2] ss:$0 sm:$0xff]  ;;  %s804_s13 = sshll.u32 %s863_s12, 4  ;;  %s805_s13 = int_to_ptr.vmem [resolvable:$false] %s804_s13 }
  0x15   : > { %733 = vmatpush3.msra.mxu0 %v226_v0  ;;  %s222_s11 = scalar_lea.vmem %s1016_s0, %s705_s8  ;;  %v528_v32 = vld [vmem:[%s1019_s3] sm:$0xff]  ;;  %s806_s22 = scalar_lea.vmem %s805_s13, 32 }
  0x16   : > { %v949_v1 = vld [vmem:[%s222_s11] sm:$0xff]  ;;  %v951_v2 = vld [vmem:[%s222_s11 + $0x8] sm:$0xff]  ;;  %s800_s11 = scalar_lea.vmem %s646_s6, 16  ;;  %p807_p0 = scmp.lt.s32.totalorder %s646_s6, %s805_s13 }
  0x17   : > { %734 = vmatprep.mubr.msk.f32.mxu0 %vm234_vm0, %v949_v1  ;;  %v714_v41 = vld [vmem:[%s1020_s4] ss:$0 sm:$0xff]  ;;  %p801_p11 = scmp.ne.s32.totalorder %s646_s6, %s800_s11  ;;  %p808_p1 = scmp.lt.s32.totalorder %s806_s22, %s800_s11 }
  0x18   : > { %735 = vmatmul.mubr.msk.f32.vlgmr.msra.gmra.mxu0 %vm234_vm0, %v951_v2 }
  0x19   : > { %p802_p12 = pnand %p801_p11, %p932_p5  ;;  %p809_p2 = por %p808_p1, %p807_p0 }
  0x1b   : > { %p803_p13 = pneg %p802_p12 }
  0x1d   : > { %p810_p3 = pnand %p809_p2, %p803_p13 }
  0xd8   : > { %v736_v4 = vpop.f32.mrf.mxu0 }
  0xd9   : > { %v313_v5 = vadd.f32 %v736_v4, %v706_v3 }
  0xda   : > { %v307_v6 = vpop.f32.mrf.mxu0 }
  0xdb   : > { %v308_v7 = vadd.f32 %v706_v3, %v307_v6  ;;  %v320_v8 = vrot.slane %v313_v5, 1 }
  0xdd   : > { %v319_v9 = vrot.slane %v308_v7, 1  ;;  %739 = vmatprep.mubr.msk.f32.mxu1 %vm234_vm0, %v308_v7 }
  0xdf   : > { %v321_v10 = vsel %vm318_vm1, %v319_v9, %v320_v8  ;;  %v325_v12 = vsel %vm318_vm1, %v320_v8, %v319_v9 }
  0xe0   : > { %v326_v11 = vmax.f32 %v308_v7, %v321_v10  ;;  %v327_v13 = vmax.f32 %v313_v5, %v325_v12 }
  0xe2   : > { %330 = vrot.lane.b32.xlu0 %v326_v11, %s862_s14 }
  0xe6   : > { %332 = vrot.lane.b32.xlu0 %v327_v13, %s862_s14 }
 0x154   : > { %v331_v14 = vpop.permute.xlu0 %330 }
 0x155   : > { %337 = vst.msk [vmem:[#allocation2] sm:$0xff] %vm336_vm2, %v331_v14 }
 0x158   : > { %v333_v15 = vpop.permute.xlu0 %332 }
 0x159   : > { %338 = vst.msk [vmem:[#allocation2 + $0x8] sm:$0xff] %vm336_vm2, %v333_v15 }
 0x160   : > { %v339_v16 = vld [vmem:[#allocation2] ss:$2 sm:$0xff] }
 0x161   : > { %440 = vrot.lane.b32.xlu0 %v339_v16, %s862_s14  ;;  %737 = vmatprep.subr.msk.mxu1 %vm234_vm0, %v339_v16 }
 0x162   : > { %738 = vmatpush3.xpose.msk.msra.mxu1 %vm234_vm0, %v339_v16 }
 0x163   : > { %747 = vmatprep.subr.mxu1 %v528_v32 }
 0x165   : > { %740 = vmatmul.mubr.msk.f32.vlgmr.msra.gmra.mxu1 %vm234_vm0, %v313_v5 }
 0x166   : > { %748 = vmatpush3.msra.mxu1 %v528_v32 }
 0x1d3   : > { %v441_v17 = vpop.permute.xlu0 %440 }
 0x1d4   : > { %742 = vmatprep.subr.mxu0 %v441_v17 }
 0x1d5   : > { %743 = vmatpush3.msra.mxu0 %v441_v17 }
 0x225   : > { %v741_v18 = vpop.f32.mrf.mxu1 }
 0x226   : > { %v425_v21 = vsel %vm234_vm0, %v741_v18, -inf }
 0x227   : > { %v413_v19 = vpop.f32.mrf.mxu1 }
 0x228   : > { %v422_v20 = vsel %vm234_vm0, %v413_v19, -inf }
 0x229   : > { %423 = vmax.xlane.f32.xlu1 %v422_v20 }
 0x22d   : > { %426 = vmax.xlane.f32.xlu1 %v425_v21 }
 0x2b2   : > { %v424_v22 = vpop.xlane.xlu1 %423 }
 0x2b3   : > { %v428_v23 = vsub.f32 %v413_v19, %v424_v22 }
 0x2b5   : > { %v430_v24 = vmul.f32 1.442695, %v428_v23 }
 0x2b6   : > { %v427_v25 = vpop.xlane.xlu1 %426 }
 0x2b7   : > { %792 = vpow2.f32 %v430_v24  ;;  %v429_v26 = vsub.f32 %v741_v18, %v427_v25 }
 0x2b9   : > { %v432_v27 = vmul.f32 1.442695, %v429_v26 }
 0x2bb   : > { %794 = vpow2.f32 %v432_v27 }
 0x2c4   : > { %v793_v28 = vpop.eup %792 }
 0x2c5   : > { %744 = vmatprep.mubr.msk.f32.mxu0 %vm234_vm0, %v793_v28  ;;  %v434_v29 = vsel %vm234_vm0, %v793_v28, 0.0 }
 0x2c6   : > { %435 = vadd.xlane.f32.xlu1 %v434_v29 }
 0x2c8   : > { %v795_v30 = vpop.eup %794 }
 0x2c9   : > { %745 = vmatmul.mubr.msk.f32.vlgmr.msra.gmra.mxu0 %vm234_vm0, %v795_v30  ;;  %v437_v31 = vsel %vm234_vm0, %v795_v30, 0.0 }
 0x2ca   : > { %438 = vadd.xlane.f32.xlu0 %v437_v31 }
 0x34f   : > { %v436_v33 = vpop.xlane.xlu1 %435 }
 0x350   : > { %796 = vrcp.f32 %v436_v33 }
 0x353   : > { %v439_v34 = vpop.xlane.xlu0 %438 }
 0x354   : > { %798 = vrcp.f32 %v439_v34 }
 0x35d   : > { %v797_v36 = vpop.eup %796 }
 0x361   : > { %v799_v38 = vpop.eup %798 }
 0x389   : > { %v746_v35 = vpop.f32.mrf.mxu0 }
 0x38a   : > { %v527_v40 = vmul.f32 %v799_v38, %v746_v35 }
 0x38b   : > { %v515_v37 = vpop.f32.mrf.mxu0 }
 0x38c   : > { %v526_v39 = vmul.f32 %v797_v36, %v515_v37 }
 0x38e   : > { %749 = vmatprep.mubr.msk.f32.mxu1 %vm234_vm0, %v526_v39 }
 0x38f   : > { %750 = vmatmul.mubr.msk.f32.vlgmr.msra.gmra.mxu1 %vm234_vm0, %v527_v40 }
 0x44f   : > { %v751_v42 = vpop.f32.mrf.mxu1 }
 0x450   : > { %v614_v43 = vadd.f32 %v751_v42, %v714_v41 }
 0x451   : > { %v608_v44 = vpop.f32.mrf.mxu1 }
 0x452   : > { %v618_v45 = vadd.f32 %v614_v43, %v951_v2  ;;  %v609_v46 = vadd.f32 %v714_v41, %v608_v44 }
 0x454   : > { %v617_v47 = vadd.f32 %v609_v46, %v949_v1  ;;  %v620_v48 = vsel %vm234_vm0, %v618_v45, 0.0 }
 0x456   : > { %v619_v49 = vsel %vm234_vm0, %v617_v47, 0.0 }
 0x457   : > { %v621_v50 = vadd.f32 %v620_v48, %v619_v49 }
 0x459   : > { %v622_v51 = vrot.slane %v621_v50, 4 }
 0x45b   : > { %v623_v52 = vadd.f32 %v622_v51, %v621_v50 }
 0x45d   : > { %v624_v53 = vrot.slane %v623_v52, 2 }
 0x45f   : > { %v625_v54 = vadd.f32 %v624_v53, %v623_v52 }
 0x461   : > { %v626_v55 = vrot.slane %v625_v54, 1 }
 0x463   : > { %v627_v56 = vadd.f32 %v626_v55, %v625_v54 }
 0x465   : > { %v629_v57 = vmul.f32 0.0625, %v627_v56 }
 0x467   : > { %631 = vst.msk [vmem:[%s217_s30] sm:$0x1] %vm630_vm3, %v629_v57 }
 0x468   : > { %813 = shalt.err (!%p810_p3)
}
 0x469   : > { %s814_s14 = scalar_lea.hbm %s643_s9, 16  ;;  %s818_s17 = scalar_lea.hbm %s1021_s5, 32 }
 0x46a   : > { %p815_p4 = scmp.ne.s32.totalorder %s643_s9, %s814_s14  ;;  %p819_p9 = scmp.lt.s32.totalorder %s643_s9, %s1021_s5 }
 0x46b   : > { %p820_p10 = scmp.lt.s32.totalorder %s818_s17, %s814_s14 }
 0x46c   : > { %p816_p7 = pnand %p815_p4, %p932_p5 }
 0x46d   : > { %p821_p11 = por %p820_p10, %p819_p9 }
 0x46e   : > { %p817_p8 = pneg %p816_p7 }
 0x470   : > { %p822_p12 = pnand %p821_p11, %p817_p8 }
 0x472   : > { %825 = shalt.err (!%p822_p12)
}
 0x473   : > { %752 = dma.vmem_to_hbm [thread:$0]  (%p932_p5), %s646_s6, 16, %s643_s9, %s633_s10  }
 0x474 PF: > { %p758_p13 = scmp.ge.s32.totalorder %s860_s21, 2  ;;  %s657_s26 = sand.u32 1, %s848_s18  }
 0x475   : > { %s658_s30 = scalar_lea.sflag [#allocation4], %s657_s26 }
 0x476   : > { %p755_p0 = pnand %p758_p13, %p936_p6 }
 0x478   : > { %p756_p1 = pneg %p755_p0 }
 0x47a   : > { %843 = dma.done.wait (%p756_p1), %s658_s30, 16  }
 0x47b   : > { %845 = vsyncadd (%p756_p1), %s658_s30, 4294967280  ;;  %p15_p2 = scmp.ge.s32.totalorder %s919_s24, 4   ;;  %s1024_s18 = smov %s852_s19 }
 0x47c   : > { %s1025_s19 = smov %s856_s20  ;;  %s1026_s20 = smov %s930_s27 }
 0x47d   : > { %s1027_s21 = smov %s919_s24  ;;  %17 = sbr.rel (!%p15_p2) target bundleno = 3 (0x3), region = 75 }
 0x482   :  { %662 = vsyncpa [#allocation4], 1 }
 0x483   :  { %664 = vsyncpa [#allocation4 + $0x1], 1 }

</bundles_post_ra>
